<compile_context>
chip_gen: v6e
topology: v6e:2x2x1
jax: 0.10.0
libtpu: 0.0.40
codegen_flags: <defaults>
</compile_context>

<pallas_src>
import math
from functools import partial

import jax
import jax.numpy as jnp
from jax.experimental import pallas as pl
from jax.experimental.pallas import tpu as pltpu

# ---- small shapes consistent with the module ----
B = 2             # batch
T = 8             # sequence length
C = 32            # n_embd
DM = 4 * C        # mlp_ratio * n_embd = 128
N = B * T         # flattened tokens = 16
LANES = 128
P = LANES // C    # tokens packed per lane-dense row = 4
INV_SQRT2 = 1.0 / math.sqrt(2.0)


def mlp_kernel(x_ref, w1_ref, w2_ref, b1_ref, b2_ref, o_ref):
    """One row-tile of packed tokens.

    x_ref : [TR, P*C]   bf16   (P tokens per row, lane-dense)
    w1_ref: [P*C, P*DM] bf16   (block-diag fc weight, VMEM-resident)
    w2_ref: [P*DM, P*C] bf16   (block-diag proj weight, VMEM-resident)
    b1_ref: [1, P*DM]   f32    (fc bias, tiled P times)
    b2_ref: [1, P*C]    f32    (proj bias, tiled P times)
    o_ref : [TR, P*C]   f32    (lane-dense packed output)
    """
    # fc matmul on the MXU, f32 accumulation.
    h = jnp.dot(x_ref[...], w1_ref[...], preferred_element_type=jnp.float32)
    h = h + b1_ref[...]

    # nn.GELU default (approximate='none'): exact erf GELU, kept in f32.
    h = 0.5 * h * (1.0 + jax.lax.erf(h * INV_SQRT2))

    # proj matmul: cast the hidden back to bf16 for the MXU, accumulate f32.
    y = jnp.dot(h.astype(jnp.bfloat16), w2_ref[...],
                preferred_element_type=jnp.float32)
    y = y + b2_ref[...]

    # Dropout(p=0.0) is the identity in the forward pass.
    o_ref[...] = y.astype(o_ref.dtype)


def prepare_params(params):
    """One-time parameter packing (block-diag weights, tiled biases, bf16)."""
    w_fc, w_proj = params["w_fc"], params["w_proj"]
    b_fc, b_proj = params["b_fc"], params["b_proj"]
    # Block-diagonal expansion: packs P independent tokens per MXU row.
    w1 = jax.scipy.linalg.block_diag(*([w_fc] * P)).astype(jnp.bfloat16)      # [P*C, P*DM]
    w2 = jax.scipy.linalg.block_diag(*([w_proj] * P)).astype(jnp.bfloat16)    # [P*DM, P*C]
    b1 = jnp.tile(b_fc, P).reshape(1, P * DM).astype(jnp.float32)
    b2 = jnp.tile(b_proj, P).reshape(1, P * C).astype(jnp.float32)
    return {"w1": w1, "w2": w2, "b1": b1, "b2": b2}


@jax.jit
def mlp_forward(x, prep):
    b_, t_, c_ = x.shape
    n_tok = b_ * t_
    assert c_ == C and n_tok % P == 0
    # TODO(synk): pad the token axis when (B*T) % P != 0; not needed here.
    R = n_tok // P                                    # packed rows
    # Free row-major repack: row r holds tokens P*r .. P*r+P-1.
    x_packed = x.reshape(R, P * C).astype(jnp.bfloat16)

    # Row-tile size: largest divisor of R up to 256 packed rows (=1024 tokens).
    TR = R if R <= 256 else max(d for d in range(1, 257) if R % d == 0)
    grid = (R // TR,)

    out_packed = pl.pallas_call(
        mlp_kernel,
        out_shape=jax.ShapeDtypeStruct((R, P * C), jnp.float32),
        grid=grid,
        in_specs=[
            pl.BlockSpec((TR, P * C), lambda i: (i, 0)),        # x tile
            pl.BlockSpec((P * C, P * DM), lambda i: (0, 0)),    # W1 resident
            pl.BlockSpec((P * DM, P * C), lambda i: (0, 0)),    # W2 resident
            pl.BlockSpec((1, P * DM), lambda i: (0, 0)),        # b1 resident
            pl.BlockSpec((1, P * C), lambda i: (0, 0)),         # b2 resident
        ],
        out_specs=pl.BlockSpec((TR, P * C), lambda i: (i, 0)),
        compiler_params=pltpu.CompilerParams(
            dimension_semantics=("parallel",)),
    )(x_packed, prep["w1"], prep["w2"], prep["b1"], prep["b2"])

    # Free row-major unpack back to token-major layout.
    return out_packed.reshape(b_, t_, C)


# ---------------- pure-JAX fp32 reference (for correctness check) -----------
def mlp_reference(x, p):
    h = x @ p["w_fc"] + p["b_fc"]
    h = 0.5 * h * (1.0 + jax.lax.erf(h * INV_SQRT2))   # exact GELU
    return h @ p["w_proj"] + p["b_proj"]               # dropout(p=0) == identity


def init_params(key):
    ks = jax.random.split(key, 4)
    scale = 0.02
    # Linear weights stored as [in, out] (pre-transposed nn.Linear weights).
    return {
        "w_fc":   scale * jax.random.normal(ks[0], (C, DM), jnp.float32),
        "b_fc":   scale * jax.random.normal(ks[1], (DM,),   jnp.float32),
        "w_proj": scale * jax.random.normal(ks[2], (DM, C), jnp.float32),
        "b_proj": scale * jax.random.normal(ks[3], (C,),    jnp.float32),
    }


# TODO(synk): BlockLinear / MonarchLinear branches of the config are not
# exercised (cfg.block_linear = cfg.monarch_linear = False); only the plain
# nn.Linear path is implemented here.

if __name__ == "__main__":
    key = jax.random.PRNGKey(0)
    k_x, k_p = jax.random.split(key)
    x = jax.random.normal(k_x, (B, T, C), jnp.float32)
    params = init_params(k_p)

    prep = prepare_params(params)          # one-time packing, outside jit path
    out = mlp_forward(x, prep)
    out = jax.block_until_ready(out)

    ref = mlp_reference(x, params)
    assert out.shape == (B, T, C)
    # bf16 MXU operands with f32 accumulation -> small quantization error vs
    # the fp32 reference; tolerance chosen accordingly.
    max_diff = jnp.max(jnp.abs(out - ref))
    assert jnp.allclose(out, ref, rtol=1e-2, atol=1e-2), (
        f"max abs diff {max_diff}")
    print("KERNEL_OK")
</pallas_src>

<mosaic_0001>
module attributes {stable_mosaic.version = 11 : i64} {
  func.func @mlp_kernel(%arg0: i32, %arg1: memref<4x128xbf16, #tpu.memory_space<vmem>>, %arg2: memref<128x512xbf16, #tpu.memory_space<vmem>>, %arg3: memref<512x128xbf16, #tpu.memory_space<vmem>>, %arg4: memref<1x512xf32, #tpu.memory_space<vmem>>, %arg5: memref<1x128xf32, #tpu.memory_space<vmem>>, %arg6: memref<4x128xf32, #tpu.memory_space<vmem>>) attributes {dimension_semantics = [#tpu.dimension_semantics<parallel>], iteration_bounds = array<i64: 1>, scalar_prefetch = 0 : i64, scratch_operands = 0 : i64, tpu.core_type = #tpu.core_type<tc>, window_params = [{transform_indices = @transform_0, window_bounds = array<i64: 4, 128>}, {pipeline_mode = #tpu.pipeline_mode<synchronous>, transform_indices = @transform_1, window_bounds = array<i64: 128, 512>}, {pipeline_mode = #tpu.pipeline_mode<synchronous>, transform_indices = @transform_2, window_bounds = array<i64: 512, 128>}, {pipeline_mode = #tpu.pipeline_mode<synchronous>, transform_indices = @transform_3, window_bounds = array<i64: 1, 512>}, {pipeline_mode = #tpu.pipeline_mode<synchronous>, transform_indices = @transform_4, window_bounds = array<i64: 1, 128>}, {transform_indices = @transform_5, window_bounds = array<i64: 4, 128>}]} {
    %c0 = arith.constant 0 : index
    %c0_0 = arith.constant 0 : index
    %0 = vector.load %arg1[%c0, %c0_0] : memref<4x128xbf16, #tpu.memory_space<vmem>>, vector<4x128xbf16>
    %c0_1 = arith.constant 0 : index
    %c0_2 = arith.constant 0 : index
    %1 = vector.load %arg2[%c0_1, %c0_2] : memref<128x512xbf16, #tpu.memory_space<vmem>>, vector<128x512xbf16>
    %cst = arith.constant dense<0.000000e+00> : vector<4x512xf32>
    %2 = tpu.matmul %0, %1, %cst {dimension_numbers = #tpu.dot_dimension_numbers<[1], [0], [0], [1], [0, 0, 1, 1], [], []>} : vector<4x128xbf16>, vector<128x512xbf16>, vector<4x512xf32> -> vector<4x512xf32>
    %c0_3 = arith.constant 0 : index
    %c0_4 = arith.constant 0 : index
    %3 = vector.load %arg4[%c0_3, %c0_4] : memref<1x512xf32, #tpu.memory_space<vmem>>, vector<1x512xf32>
    %4 = vector.broadcast %3 : vector<1x512xf32> to vector<4x512xf32>
    %5 = arith.addf %2, %4 : vector<4x512xf32>
    %cst_5 = arith.constant 5.000000e-01 : f32
    %6 = vector.broadcast %cst_5 : f32 to vector<4x512xf32>
    %7 = arith.mulf %6, %5 : vector<4x512xf32>
    %cst_6 = arith.constant 0.707106769 : f32
    %8 = vector.broadcast %cst_6 : f32 to vector<4x512xf32>
    %9 = arith.mulf %5, %8 : vector<4x512xf32>
    %10 = math.erf %9 : vector<4x512xf32>
    %cst_7 = arith.constant 1.000000e+00 : f32
    %11 = vector.broadcast %cst_7 : f32 to vector<4x512xf32>
    %12 = arith.addf %11, %10 : vector<4x512xf32>
    %13 = arith.mulf %7, %12 : vector<4x512xf32>
    %14 = arith.truncf %13 : vector<4x512xf32> to vector<4x512xbf16>
    %c0_8 = arith.constant 0 : index
    %c0_9 = arith.constant 0 : index
    %15 = vector.load %arg3[%c0_8, %c0_9] : memref<512x128xbf16, #tpu.memory_space<vmem>>, vector<512x128xbf16>
    %cst_10 = arith.constant dense<0.000000e+00> : vector<4x128xf32>
    %16 = tpu.matmul %14, %15, %cst_10 {dimension_numbers = #tpu.dot_dimension_numbers<[1], [0], [0], [1], [0, 0, 1, 1], [], []>} : vector<4x512xbf16>, vector<512x128xbf16>, vector<4x128xf32> -> vector<4x128xf32>
    %c0_11 = arith.constant 0 : index
    %c0_12 = arith.constant 0 : index
    %17 = vector.load %arg5[%c0_11, %c0_12] : memref<1x128xf32, #tpu.memory_space<vmem>>, vector<1x128xf32>
    %18 = vector.broadcast %17 : vector<1x128xf32> to vector<4x128xf32>
    %19 = arith.addf %16, %18 : vector<4x128xf32>
    %c0_13 = arith.constant 0 : index
    %c0_14 = arith.constant 0 : index
    %20 = vector.load %arg6[%c0_13, %c0_14] : memref<4x128xf32, #tpu.memory_space<vmem>>, vector<4x128xf32>
    tpu.vector_store %arg6[%c0_13, %c0_14], %19 {strides = array<i32>} : memref<4x128xf32, #tpu.memory_space<vmem>>, vector<4x128xf32>,
    return
  }
  func.func @transform_0(%arg0: i32) -> (i32, i32) {
    %c0_i32 = arith.constant 0 : i32
    %c0_i32_0 = arith.constant 0 : i32
    return %arg0, %c0_i32 : i32, i32
  }
  func.func @transform_1(%arg0: i32) -> (i32, i32) {
    %c0_i32 = arith.constant 0 : i32
    %c0_i32_0 = arith.constant 0 : i32
    %c0_i32_1 = arith.constant 0 : i32
    return %c0_i32, %c0_i32_0 : i32, i32
  }
  func.func @transform_2(%arg0: i32) -> (i32, i32) {
    %c0_i32 = arith.constant 0 : i32
    %c0_i32_0 = arith.constant 0 : i32
    %c0_i32_1 = arith.constant 0 : i32
    return %c0_i32, %c0_i32_0 : i32, i32
  }
  func.func @transform_3(%arg0: i32) -> (i32, i32) {
    %c0_i32 = arith.constant 0 : i32
    %c0_i32_0 = arith.constant 0 : i32
    %c0_i32_1 = arith.constant 0 : i32
    return %c0_i32, %c0_i32_0 : i32, i32
  }
  func.func @transform_4(%arg0: i32) -> (i32, i32) {
    %c0_i32 = arith.constant 0 : i32
    %c0_i32_0 = arith.constant 0 : i32
    %c0_i32_1 = arith.constant 0 : i32
    return %c0_i32, %c0_i32_0 : i32, i32
  }
  func.func @transform_5(%arg0: i32) -> (i32, i32) {
    %c0_i32 = arith.constant 0 : i32
    %c0_i32_0 = arith.constant 0 : i32
    return %arg0, %c0_i32 : i32, i32
  }
}

</mosaic_0001>

<bundles_post_ra>
// kernel: mlp_forward.1
= control target key start
LH: loop header
LB: loop body
LE: loop exit
PB: predicated region body
PF: predicated region fallthrough
CT: control target
= control target key end

     0   :  { %10 = vsyncpa [#allocation3], 0  ;;  %s1023_s0 = inlined_call_operand.vmem [shape: bf16[4,128], index: 0, kind: input, shape index: {}]   ;;  %s1024_s1 = inlined_call_operand.hbm [shape: bf16[128,512], index: 1, kind: input, shape index: {}]   ;;  %s1025_s2 = inlined_call_operand.hbm [shape: bf16[512,128], index: 2, kind: input, shape index: {}]   ;;  %s1026_s3 = inlined_call_operand.vmem [shape: f32[1,512], index: 3, kind: input, shape index: {}]   ;;  %s1027_s4 = inlined_call_operand.vmem [shape: f32[1,128], index: 4, kind: input, shape index: {}]   ;;  %s1028_s5 = inlined_call_operand.vmem [shape: f32[4,128], index: 5, kind: output, shape index: {}]  }
   0x1   :  { %11 = vsyncpa [#allocation5], 0  ;;  %s968_s18 = smov [#allocation2]  }
   0x2   :  { %s19_s19 = sshll.u32 %s968_s18, 4  ;;  %s20_s19 = int_to_ptr.vmem [resolvable:$true] %s19_s19 }
   0x3   :  { %s932_s20 = scalar_lea.vmem %s20_s19, 4096  ;;  %p937_p1 = scmp.lt.s32.totalorder %s20_s19, %s20_s19 }
   0x4   :  { %p933_p0 = scmp.ne.s32.totalorder %s20_s19, %s932_s20  ;;  %p938_p2 = scmp.lt.s32.totalorder %s932_s20, %s932_s20 }
   0x6   :  { %p939_p3 = por %p938_p2, %p937_p1 }
   0x8   :  { %p940_p4 = pnand %p939_p3, %p933_p0 }
   0xa   :  { %943 = shalt.err (!%p940_p4)
}
   0xb   :  { %s969_s21 = smov 256   ;;  %s970_s22 = smov 16  }
   0xc   :  { %25 = dma.hbm_to_vmem [thread:$0]  %s1024_s1, 4096, %s20_s19, [#allocation3], %s969_s21, %s969_s21, %s970_s22  }
   0xd   :  { %s971_s25 = smov [#allocation4]  }
   0xe   :  { %s31_s26 = sshll.u32 %s971_s25, 4  ;;  %s32_s26 = int_to_ptr.vmem [resolvable:$true] %s31_s26 }
   0xf   :  { %s952_s27 = scalar_lea.vmem %s32_s26, 4096  ;;  %p957_p6 = scmp.lt.s32.totalorder %s32_s26, %s32_s26 }
  0x10   :  { %p953_p5 = scmp.ne.s32.totalorder %s32_s26, %s952_s27  ;;  %p958_p7 = scmp.lt.s32.totalorder %s952_s27, %s952_s27 }
  0x12   :  { %p959_p8 = por %p958_p7, %p957_p6 }
  0x14   :  { %p960_p9 = pnand %p959_p8, %p953_p5 }
  0x16   :  { %963 = shalt.err (!%p960_p9)
}
  0x17   :  { %s972_s28 = smov 64   ;;  %s973_s29 = smov 4  }
  0x18   :  { %37 = dma.hbm_to_vmem [thread:$0]  %s1025_s2, 4096, %s32_s26, [#allocation5], %s972_s28, %s972_s28, %s973_s29  }
  0x19   :  { %964 = dma.done.wait [#allocation3], 4096  }
  0x1a   :  { %965 = vsyncadd [#allocation3], 4294963200 }
  0x1b   :  { %966 = dma.done.wait [#allocation5], 4096  }
  0x1c   :  { %967 = vsyncadd [#allocation5], 4294963200  ;;  %v974_v0 = vmov 0   ;;  %v836_v1 = vld [vmem:[#allocation2 + $0xe4] ss:$16 sps:$4 sm:$0xff]   ;;  %v884_v33 = vld [vmem:[#allocation4 + $0x78] sm:$0xff]  }
  0x1d   :  { %296 = vmatprep.mubr.bf16.mxu0 %v974_v0  ;;  %337 = vmatprep.mubr.bf16.mxu1 %v974_v0  ;;  %v838_v2 = vld [vmem:[#allocation2 + $0xec] ss:$16 sps:$4 sm:$0xff]   ;;  %v840_v3 = vld [vmem:[#allocation2 + $0xe0] ss:$16 sps:$4 sm:$0xff]   ;;  %v841_v4 = vld [vmem:[#allocation2 + $0xe8] ss:$16 sps:$4 sm:$0xff]  }
  0x1e   :  { %264 = vmatprep.subr.bf16.mxu0 %v836_v1  ;;  %305 = vmatprep.subr.bf16.mxu1 %v838_v2  ;;  %v842_v5 = vld [vmem:[#allocation2 + $0xc4] ss:$16 sps:$4 sm:$0xff]   ;;  %v844_v6 = vld [vmem:[#allocation2 + $0xcc] ss:$16 sps:$4 sm:$0xff]   ;;  %v846_v7 = vld [vmem:[#allocation2 + $0xc0] ss:$16 sps:$4 sm:$0xff]   ;;  %v84_v2 = vlaneseq }
  0x1f   :  { %265 = vmatpush1.bf16.msra.mxu0 %v840_v3  ;;  %306 = vmatpush1.bf16.msra.mxu1 %v841_v4  ;;  %v847_v8 = vld [vmem:[#allocation2 + $0xc8] ss:$16 sps:$4 sm:$0xff]   ;;  %v848_v9 = vld [vmem:[#allocation2 + $0xa4] ss:$16 sps:$4 sm:$0xff]   ;;  %v850_v10 = vld [vmem:[#allocation2 + $0xac] ss:$16 sps:$4 sm:$0xff]  }
  0x20   :  { %266 = vmatprep.subr.bf16.mxu0 %v842_v5  ;;  %307 = vmatprep.subr.bf16.mxu1 %v844_v6  ;;  %v852_v11 = vld [vmem:[#allocation2 + $0xa0] ss:$16 sps:$4 sm:$0xff]   ;;  %v853_v12 = vld [vmem:[#allocation2 + $0xa8] ss:$16 sps:$4 sm:$0xff]   ;;  %v854_v13 = vld [vmem:[#allocation2 + $0x84] ss:$16 sps:$4 sm:$0xff]  }
  0x21   :  { %v856_v14 = vld [vmem:[#allocation2 + $0x8c] ss:$16 sps:$4 sm:$0xff]   ;;  %v858_v15 = vld [vmem:[#allocation2 + $0x80] ss:$16 sps:$4 sm:$0xff]   ;;  %v859_v16 = vld [vmem:[#allocation2 + $0x88] ss:$16 sps:$4 sm:$0xff]  }
  0x22   :  { %v860_v17 = vld [vmem:[#allocation2 + $0x64] ss:$16 sps:$4 sm:$0xff]   ;;  %v862_v18 = vld [vmem:[#allocation2 + $0x6c] ss:$16 sps:$4 sm:$0xff]   ;;  %v864_v19 = vld [vmem:[#allocation2 + $0x60] ss:$16 sps:$4 sm:$0xff]  }
  0x23   :  { %267 = vmatpush1.bf16.msra.mxu0 %v846_v7  ;;  %308 = vmatpush1.bf16.msra.mxu1 %v847_v8  ;;  %v865_v20 = vld [vmem:[#allocation2 + $0x68] ss:$16 sps:$4 sm:$0xff]   ;;  %v866_v21 = vld [vmem:[#allocation2 + $0x44] ss:$16 sps:$4 sm:$0xff]   ;;  %v868_v22 = vld [vmem:[#allocation2 + $0x4c] ss:$16 sps:$4 sm:$0xff]  }
  0x24   :  { %268 = vmatprep.subr.bf16.mxu0 %v848_v9  ;;  %309 = vmatprep.subr.bf16.mxu1 %v850_v10  ;;  %v870_v23 = vld [vmem:[#allocation2 + $0x40] ss:$16 sps:$4 sm:$0xff]   ;;  %v871_v24 = vld [vmem:[#allocation2 + $0x48] ss:$16 sps:$4 sm:$0xff]   ;;  %v872_v25 = vld [vmem:[#allocation2 + $0x24] ss:$16 sps:$4 sm:$0xff]  }
  0x25   :  { %v874_v26 = vld [vmem:[#allocation2 + $0x2c] ss:$16 sps:$4 sm:$0xff]   ;;  %v876_v27 = vld [vmem:[#allocation2 + $0x20] ss:$16 sps:$4 sm:$0xff]   ;;  %v877_v28 = vld [vmem:[#allocation2 + $0x28] ss:$16 sps:$4 sm:$0xff]  }
  0x26   :  { %v878_v29 = vld [vmem:[#allocation2 + $0x4] ss:$16 sps:$4 sm:$0xff]   ;;  %v880_v30 = vld [vmem:[#allocation2 + $0xc] ss:$16 sps:$4 sm:$0xff]   ;;  %v882_v31 = vld [vmem:[#allocation2] ss:$16 sps:$4 sm:$0xff]  }
  0x27   :  { %269 = vmatpush1.bf16.msra.mxu0 %v852_v11  ;;  %310 = vmatpush1.bf16.msra.mxu1 %v853_v12  ;;  %v883_v32 = vld [vmem:[#allocation2 + $0x8] ss:$16 sps:$4 sm:$0xff]   ;;  %v49_v35 = vld [vmem:[%s1023_s0] sm:$0x3]  ;;  %v888_v38 = vld [vmem:[#allocation4 + $0x70] sm:$0xff]   ;;  %v85_v3 = vshrl.u32 %v84_v2, 7 }
  0x28   :  { %270 = vmatprep.subr.bf16.mxu0 %v854_v13  ;;  %311 = vmatprep.subr.bf16.mxu1 %v856_v14  ;;  %v885_v34 = vld [vmem:[#allocation4 + $0xf8] sm:$0xff]   ;;  %v889_v39 = vld [vmem:[#allocation4 + $0xf0] sm:$0xff]   ;;  %v892_v42 = vld [vmem:[#allocation4 + $0x68] sm:$0xff]  }
  0x29   :  { %v886_v36 = vld [vmem:[#allocation4 + $0x38] sm:$0xff]   ;;  %v890_v40 = vld [vmem:[#allocation4 + $0x30] sm:$0xff]   ;;  %v893_v43 = vld [vmem:[#allocation4 + $0xe8] sm:$0xff]   ;;  %v86_v4 = vsub.s32 0, %v85_v3  ;;  %v94_v5 = vsub.s32 2, %v85_v3  ;;  %v90_v7 = vsub.s32 1, %v85_v3 }
  0x2a   :  { %v887_v37 = vld [vmem:[#allocation4 + $0xb8] sm:$0xff]   ;;  %v891_v41 = vld [vmem:[#allocation4 + $0xb0] sm:$0xff]   ;;  %v894_v44 = vld [vmem:[#allocation4 + $0x28] sm:$0xff]   ;;  %v98_v8 = vsub.s32 3, %v85_v3 }
  0x2b   :  { %271 = vmatpush1.bf16.msra.mxu0 %v858_v15  ;;  %312 = vmatpush1.bf16.msra.mxu1 %v859_v16  ;;  %v895_v45 = vld [vmem:[#allocation4 + $0xa8] sm:$0xff]   ;;  %v896_v46 = vld [vmem:[#allocation4 + $0x60] sm:$0xff]   ;;  %v900_v50 = vld [vmem:[#allocation4 + $0x58] sm:$0xff]  }
  0x2c   :  { %272 = vmatprep.subr.bf16.mxu0 %v860_v17  ;;  %313 = vmatprep.subr.bf16.mxu1 %v862_v18  ;;  %v897_v47 = vld [vmem:[#allocation4 + $0xe0] sm:$0xff]   ;;  %v901_v51 = vld [vmem:[#allocation4 + $0xd8] sm:$0xff]   ;;  %v904_v54 = vld [vmem:[#allocation4 + $0x50] sm:$0xff]  }
  0x2d   :  { %v898_v48 = vld [vmem:[#allocation4 + $0x20] sm:$0xff]   ;;  %v902_v52 = vld [vmem:[#allocation4 + $0x18] sm:$0xff]   ;;  %v905_v55 = vld [vmem:[#allocation4 + $0xd0] sm:$0xff]  }
  0x2e   :  { %v899_v49 = vld [vmem:[#allocation4 + $0xa0] sm:$0xff]   ;;  %v903_v53 = vld [vmem:[#allocation4 + $0x98] sm:$0xff]   ;;  %v906_v56 = vld [vmem:[#allocation4 + $0x10] sm:$0xff]  }
  0x2f   :  { %273 = vmatpush1.bf16.msra.mxu0 %v864_v19  ;;  %314 = vmatpush1.bf16.msra.mxu1 %v865_v20  ;;  %v907_v57 = vld [vmem:[#allocation4 + $0x90] sm:$0xff]   ;;  %v908_v58 = vld [vmem:[#allocation4 + $0x48] sm:$0xff]   ;;  %v912_v62 = vld [vmem:[#allocation4 + $0x40] sm:$0xff]  }
  0x30   :  { %274 = vmatprep.subr.bf16.mxu0 %v866_v21  ;;  %315 = vmatprep.subr.bf16.mxu1 %v868_v22  ;;  %v909_v59 = vld [vmem:[#allocation4 + $0xc8] sm:$0xff]   ;;  %v913_v63 = vld [vmem:[#allocation4 + $0xc0] sm:$0xff]  }
  0x31   :  { %v910_v60 = vld [vmem:[#allocation4 + $0x8] sm:$0xff]   ;;  %v914_v0 = vld [vmem:[#allocation4] sm:$0xff]  }
  0x32   :  { %v911_v61 = vld [vmem:[#allocation4 + $0x88] sm:$0xff]   ;;  %v915_v1 = vld [vmem:[#allocation4 + $0x80] sm:$0xff]  }
  0x33   :  { %275 = vmatpush1.bf16.msra.mxu0 %v870_v23  ;;  %316 = vmatpush1.bf16.msra.mxu1 %v871_v24  ;;  %v82_v6 = vld [vmem:[%s1026_s3] sm:$0xf] }
  0x34   :  { %276 = vmatprep.subr.bf16.mxu0 %v872_v25  ;;  %317 = vmatprep.subr.bf16.mxu1 %v874_v26  ;;  %v87_v9 = vrot.slane %v82_v6, %v86_v4  ;;  %v95_v10 = vrot.slane %v82_v6, %v94_v5  ;;  %v91_v13 = vrot.slane %v82_v6, %v90_v7 }
  0x35   :  { %v99_v14 = vrot.slane %v82_v6, %v98_v8 }
  0x37   :  { %277 = vmatpush1.bf16.msra.mxu0 %v876_v27  ;;  %318 = vmatpush1.bf16.msra.mxu1 %v877_v28 }
  0x38   :  { %278 = vmatprep.subr.bf16.mxu0 %v878_v29  ;;  %319 = vmatprep.subr.bf16.mxu1 %v880_v30 }
  0x3b   :  { %279 = vmatpush1.bf16.msra.mxu0 %v882_v31  ;;  %320 = vmatpush1.bf16.msra.mxu1 %v883_v32 }
  0x3c   :  { %785 = vmatprep.subr.bf16.mxu0 %v884_v33  ;;  %807 = vmatprep.subr.bf16.mxu1 %v885_v34 }
  0x3e   :  { %297 = vmatmul.mubr.bf16.vlgmr.msra.gmra.mxu0 %v49_v35  ;;  %338 = vmatmul.mubr.bf16.vlgmr.msra.gmra.mxu1 %v49_v35 }
  0x3f   :  { %786 = vmatpush3.bf16.msra.mxu0 %v886_v36  ;;  %808 = vmatpush3.bf16.msra.mxu1 %v887_v37 }
  0x40   :  { %787 = vmatprep.subr.bf16.mxu0 %v888_v38  ;;  %809 = vmatprep.subr.bf16.mxu1 %v889_v39 }
  0x43   :  { %788 = vmatpush3.bf16.msra.mxu0 %v890_v40  ;;  %810 = vmatpush3.bf16.msra.mxu1 %v891_v41 }
  0x44   :  { %789 = vmatprep.subr.bf16.mxu0 %v892_v42  ;;  %811 = vmatprep.subr.bf16.mxu1 %v893_v43 }
  0x47   :  { %790 = vmatpush3.bf16.msra.mxu0 %v894_v44  ;;  %812 = vmatpush3.bf16.msra.mxu1 %v895_v45 }
  0x48   :  { %791 = vmatprep.subr.bf16.mxu0 %v896_v46  ;;  %813 = vmatprep.subr.bf16.mxu1 %v897_v47 }
  0x4b   :  { %792 = vmatpush3.bf16.msra.mxu0 %v898_v48  ;;  %814 = vmatpush3.bf16.msra.mxu1 %v899_v49 }
  0x4c   :  { %793 = vmatprep.subr.bf16.mxu0 %v900_v50  ;;  %815 = vmatprep.subr.bf16.mxu1 %v901_v51  ;;  %v752_v51 = vld [vmem:[%s1027_s4] ss:$0 sm:$0xff] }
  0x4f   :  { %794 = vmatpush3.bf16.msra.mxu0 %v902_v52  ;;  %816 = vmatpush3.bf16.msra.mxu1 %v903_v53 }
  0x50   :  { %795 = vmatprep.subr.bf16.mxu0 %v904_v54  ;;  %817 = vmatprep.subr.bf16.mxu1 %v905_v55 }
  0x53   :  { %796 = vmatpush3.bf16.msra.mxu0 %v906_v56  ;;  %818 = vmatpush3.bf16.msra.mxu1 %v907_v57 }
  0x54   :  { %797 = vmatprep.subr.bf16.mxu0 %v908_v58  ;;  %819 = vmatprep.subr.bf16.mxu1 %v909_v59 }
  0x57   :  { %798 = vmatpush3.bf16.msra.mxu0 %v910_v60  ;;  %820 = vmatpush3.bf16.msra.mxu1 %v911_v61 }
  0x58   :  { %799 = vmatprep.subr.bf16.mxu0 %v912_v62  ;;  %821 = vmatprep.subr.bf16.mxu1 %v913_v63 }
  0x5b   :  { %800 = vmatpush3.bf16.msra.mxu0 %v914_v0  ;;  %822 = vmatpush3.bf16.msra.mxu1 %v915_v1 }
  0xfe   :  { %v298_v11 = vpop.f32.mrf.mxu0  ;;  %v339_v12 = vpop.f32.mrf.mxu1 }
  0xff   :  { %v299_v15 = vadd.f32 %v298_v11, %v87_v9  ;;  %v340_v16 = vadd.f32 %v339_v12, %v95_v10 }
 0x100   :  { %v300_v17 = vpop.f32.mrf.mxu0  ;;  %v341_v18 = vpop.f32.mrf.mxu1 }
 0x101   :  { %v350_v19 = vmul.f32 0.70710677, %v299_v15  ;;  %v352_v20 = vmul.f32 0.70710677, %v340_v16  ;;  %v301_v21 = vadd.f32 %v300_v17, %v91_v13  ;;  %v342_v22 = vadd.f32 %v341_v18, %v99_v14 }
 0x102   :  { %v302_v23 = vpop.f32.mrf.mxu0  ;;  %v343_v24 = vpop.f32.mrf.mxu1  ;;  %v346_v34 = vmul.f32 0.5, %v299_v15  ;;  %v348_v36 = vmul.f32 0.5, %v340_v16 }
 0x103   :  { %916 = verf.f32 %v350_v19  ;;  %v351_v25 = vmul.f32 0.70710677, %v301_v21  ;;  %v353_v28 = vmul.f32 0.70710677, %v342_v22  ;;  %v347_v37 = vmul.f32 0.5, %v301_v21 }
 0x104   :  { %918 = verf.f32 %v352_v20  ;;  %v303_v26 = vpop.f32.mrf.mxu0  ;;  %v344_v27 = vpop.f32.mrf.mxu1  ;;  %v349_v40 = vmul.f32 0.5, %v342_v22 }
 0x105   :  { %920 = verf.f32 %v351_v25 }
 0x106   :  { %922 = verf.f32 %v353_v28 }
 0x110   :  { %v917_v29 = vpop.eup %916 }
 0x111   :  { %v919_v30 = vpop.eup %918  ;;  %v358_v31 = vadd.f32 1.0, %v917_v29 }
 0x112   :  { %v360_v32 = vadd.f32 1.0, %v919_v30  ;;  %v921_v33 = vpop.eup %920 }
 0x113   :  { %v923_v35 = vpop.eup %922  ;;  %v359_v38 = vadd.f32 1.0, %v921_v33  ;;  %v362_v39 = vmul.f32 %v358_v31, %v346_v34 }
 0x114   :  { %v361_v41 = vadd.f32 1.0, %v923_v35  ;;  %v364_v42 = vmul.f32 %v360_v32, %v348_v36 }
 0x115   :  { %v363_v43 = vmul.f32 %v359_v38, %v347_v37  ;;  %v366_v46 = vpack.c.bf16 %v362_v39, %v362_v39 }
 0x116   :  { %v365_v44 = vmul.f32 %v361_v41, %v349_v40  ;;  %v368_v48 = vpack.c.bf16 %v364_v42, %v364_v42 }
 0x117   :  { %v367_v45 = vpack.c.bf16 %v363_v43, %v363_v43 }
 0x118   :  { %v369_v47 = vpack.c.bf16 %v365_v44, %v365_v44 }
 0x119   :  { %665 = vmatprep.mubr.bf16.mxu0 %v367_v45 }
 0x11a   :  { %705 = vmatprep.mubr.bf16.mxu1 %v369_v47  ;;  %666 = vmatmul.mubr.bf16.vlgmr.msra.gmra.mxu0 %v366_v46 }
 0x11b   :  { %706 = vmatmul.mubr.bf16.vlgmr.msra.gmra.mxu1 %v368_v48 }
 0x1da   :  { %v801_v49 = vpop.f32.mrf.mxu0 }
 0x1db   :  { %v823_v50 = vpop.f32.mrf.mxu1 }
 0x1dc   :  { %v802_v52 = vpop.f32.mrf.mxu0 }
 0x1dd   :  { %v803_v53 = vadd.f32 %v802_v52, %v801_v49  ;;  %v824_v54 = vpop.f32.mrf.mxu1 }
 0x1de   :  { %v804_v55 = vpop.f32.mrf.mxu0  ;;  %v825_v57 = vadd.f32 %v824_v54, %v823_v50 }
 0x1df   :  { %v668_v56 = vadd.f32 %v803_v53, %v752_v51  ;;  %v826_v58 = vpop.f32.mrf.mxu1 }
 0x1e0   :  { %v805_v59 = vpop.f32.mrf.mxu0 }
 0x1e1   :  { %v708_v60 = vadd.f32 %v825_v57, %v668_v56  ;;  %v827_v61 = vpop.f32.mrf.mxu1 }
 0x1e3   :  { %713 = vst [vmem:[%s1028_s5] sm:$0xf] %v708_v60 }
 0x1e4   :  { %718 = vsyncpa [#allocation3], 1 }
 0x1e5   :  { %719 = vsyncpa [#allocation5], 1 }

</bundles_post_ra>
